<compile_context>
chip_gen: v7x
topology: tpu7x:2x2x1
jax: 0.10.0
libtpu: 0.0.40
codegen_flags: <defaults>
</compile_context>

<pallas_src>
import functools

import jax
import jax.numpy as jnp
from jax.experimental import pallas as pl
from jax.experimental.pallas import tpu as pltpu


# ----------------------------------------------------------------------------
# Fused kernel: BN-affine + LeakyReLU + zero-padded 3x3 conv (one MXU matmul).
# Works on channel-flattened row slabs:
#   x_ref     : (1, H, W*Cin)
#   scale/shift: (1, W*Cin)          (per-channel BN affine, tiled over W)
#   w_ref     : (KH*KW*Wo*Cin, Wo*Cout)  block-diagonal "W-batched" conv weight
#   b_ref     : (1, Wo*Cout)         (bias tiled over Wo)
#   o_ref     : (1, Ho, Wo*Cout)     (lane-dense output slab)
#   pad_ref   : (Hp, Wp*Cin) VMEM scratch (zero halo)
# ----------------------------------------------------------------------------
def _fused_kernel(x_ref, scale_ref, shift_ref, w_ref, b_ref, o_ref, pad_ref, *,
                  H, W, Ho, Wo, Cin, KH, KW, PH, PW, neg_slope):
    # Zero the padded scratch every step (cheap at this size; the interior is
    # overwritten below and the halo must be zero).  Not gated on program_id
    # so it stays correct if the grid is split across cores.
    pad_ref[...] = jnp.zeros_like(pad_ref)

    # BatchNorm as per-channel affine (folded in wrapper), then LeakyReLU(0.2).
    x = x_ref[0]                                        # (H, W*Cin) f32
    a = x * scale_ref[...] + shift_ref[...]
    a = jnp.where(a >= 0, a, neg_slope * a)

    # Write activations into the zero-padded scratch interior.
    pad_ref[pl.ds(PH, H), pl.ds(PW * Cin, W * Cin)] = a

    # Gather the KH*KW shifted row slabs; each tap (kh, kw) is the contiguous
    # lane window [kw*Cin, kw*Cin + Wo*Cin) of rows [kh, kh + Ho).
    taps = [pad_ref[pl.ds(kh, Ho), pl.ds(kw * Cin, Wo * Cin)]
            for kh in range(KH) for kw in range(KW)]
    patch = jnp.concatenate(taps, axis=1)               # (Ho, KH*KW*Wo*Cin)

    # One MXU matmul against the block-diagonal weight -> (Ho, Wo*Cout).
    y = jnp.dot(patch, w_ref[...], preferred_element_type=jnp.float32)
    o_ref[0] = (y + b_ref[...]).astype(o_ref.dtype)


# ----------------------------------------------------------------------------
# Wrapper (NCHW in / NCHW out, like the PyTorch module)
# ----------------------------------------------------------------------------
def u_bn_relu_conv_forward(x_nchw, gamma, beta, conv_w, conv_b,
                           *, eps=1e-3, neg_slope=0.2):
    N, Cin, H, W = x_nchw.shape
    Cout, Cin_w, KH, KW = conv_w.shape
    assert Cin_w == Cin
    PH, PW = KH // 2, KW // 2
    Ho = H + 2 * PH - KH + 1
    Wo = W + 2 * PW - KW + 1
    Hp = H + 2 * PH

    xf = x_nchw.astype(jnp.float32)

    # ---- BatchNorm2d training-mode batch statistics (two-pass, in XLA) -----
    mean = jnp.mean(xf, axis=(0, 2, 3))                 # (Cin,)
    var = jnp.var(xf, axis=(0, 2, 3))                   # biased, two-pass
    scale = gamma.astype(jnp.float32) / jnp.sqrt(var + eps)
    shift = beta.astype(jnp.float32) - mean * scale

    # ---- channel-flattened row slabs (channels packed onto lanes) ----------
    x_rows = jnp.transpose(xf, (0, 2, 3, 1)).reshape(N, H, W * Cin)
    scale_row = jnp.tile(scale, W).reshape(1, W * Cin)
    shift_row = jnp.tile(shift, W).reshape(1, W * Cin)
    bias_row = jnp.tile(conv_b.astype(jnp.float32), Wo).reshape(1, Wo * Cout)

    # ---- block-diagonal "W-batched" conv weight -----------------------------
    # big_w[((kh*KW + kw)*Wo + j)*Cin + c, j'*Cout + co] = (j == j') * w[kh,kw,c,co]
    w_hwio = jnp.transpose(conv_w, (2, 3, 1, 0)).astype(jnp.float32)  # (KH,KW,Cin,Cout)
    eye_w = jnp.eye(Wo, dtype=jnp.float32)
    big_w = jnp.einsum("jk,hwco->hwjcko", eye_w, w_hwio).reshape(
        KH * KW * Wo * Cin, Wo * Cout)

    kern = functools.partial(
        _fused_kernel, H=H, W=W, Ho=Ho, Wo=Wo, Cin=Cin,
        KH=KH, KW=KW, PH=PH, PW=PW, neg_slope=neg_slope)

    out = pl.pallas_call(
        kern,
        out_shape=jax.ShapeDtypeStruct((N, Ho, Wo * Cout), jnp.float32),
        grid=(N,),
        in_specs=[
            pl.BlockSpec((1, H, W * Cin), lambda n: (n, 0, 0)),
            pl.BlockSpec((1, W * Cin), lambda n: (0, 0)),
            pl.BlockSpec((1, W * Cin), lambda n: (0, 0)),
            pl.BlockSpec((KH * KW * Wo * Cin, Wo * Cout), lambda n: (0, 0)),
            pl.BlockSpec((1, Wo * Cout), lambda n: (0, 0)),
        ],
        out_specs=pl.BlockSpec((1, Ho, Wo * Cout), lambda n: (n, 0, 0)),
        scratch_shapes=[pltpu.VMEM((Hp, (W + 2 * PW) * Cin), jnp.float32)],
        compiler_params=pltpu.CompilerParams(
            dimension_semantics=("parallel",)),
    )(x_rows, scale_row, shift_row, big_w, bias_row)

    # (N, Ho, Wo*Cout) -> (N, Ho, Wo, Cout) -> nearest x2 upsample -> NCHW.
    y = out.reshape(N, Ho, Wo, Cout)
    up = jnp.broadcast_to(y[:, :, None, :, None, :],
                          (N, Ho, 2, Wo, 2, Cout)).reshape(
        N, 2 * Ho, 2 * Wo, Cout)
    return jnp.transpose(up, (0, 3, 1, 2))


# ----------------------------------------------------------------------------
# Pure-JAX reference for correctness checking
# ----------------------------------------------------------------------------
def _reference(x_nchw, gamma, beta, conv_w, conv_b, *, eps=1e-3, neg_slope=0.2):
    mean = x_nchw.mean(axis=(0, 2, 3), keepdims=True)
    var = x_nchw.var(axis=(0, 2, 3), keepdims=True)       # biased
    a = (x_nchw - mean) / jnp.sqrt(var + eps)
    a = a * gamma[None, :, None, None] + beta[None, :, None, None]
    a = jnp.where(a >= 0, a, neg_slope * a)
    KH, KW = conv_w.shape[2], conv_w.shape[3]
    y = jax.lax.conv_general_dilated(
        a, conv_w, window_strides=(1, 1),
        padding=((KH // 2, KH // 2), (KW // 2, KW // 2)),
        dimension_numbers=("NCHW", "OIHW", "NCHW"))
    y = y + conv_b[None, :, None, None]
    y = jnp.repeat(jnp.repeat(y, 2, axis=2), 2, axis=3)    # nearest x2
    return y


if __name__ == "__main__":
    # _u_bn_relu_conv(in_filters=4, nb_filters=8, fw=3, fh=3, subsample=1)
    N, Cin, H, W = 2, 4, 16, 16
    Cout, KH, KW = 8, 3, 3

    key = jax.random.PRNGKey(0)
    kx, kg, kb, kw, kc = jax.random.split(key, 5)
    x = jax.random.normal(kx, (N, Cin, H, W), dtype=jnp.float32)
    gamma = 1.0 + 0.1 * jax.random.normal(kg, (Cin,), dtype=jnp.float32)
    beta = 0.1 * jax.random.normal(kb, (Cin,), dtype=jnp.float32)
    conv_w = 0.1 * jax.random.normal(kw, (Cout, Cin, KH, KW), dtype=jnp.float32)
    conv_b = 0.1 * jax.random.normal(kc, (Cout,), dtype=jnp.float32)

    out = u_bn_relu_conv_forward(x, gamma, beta, conv_w, conv_b)
    out = jax.block_until_ready(out)

    ref = _reference(x, gamma, beta, conv_w, conv_b)
    assert out.shape == (N, Cout, 2 * H, 2 * W), out.shape
    assert jnp.allclose(out, ref, atol=1e-4, rtol=1e-4), float(
        jnp.max(jnp.abs(out - ref)))

    print("KERNEL_OK")
</pallas_src>

<mosaic_0001>
module attributes {stable_mosaic.version = 11 : i64} {
  func.func @_fused_kernel(%arg0: i32, %arg1: memref<1x16x64xf32, #tpu.memory_space<vmem>>, %arg2: memref<1x64xf32, #tpu.memory_space<vmem>>, %arg3: memref<1x64xf32, #tpu.memory_space<vmem>>, %arg4: memref<576x128xf32, #tpu.memory_space<vmem>>, %arg5: memref<1x128xf32, #tpu.memory_space<vmem>>, %arg6: memref<1x16x128xf32, #tpu.memory_space<vmem>>, %arg7: memref<18x72xf32, #tpu.memory_space<vmem>>) attributes {dimension_semantics = [#tpu.dimension_semantics<parallel>], iteration_bounds = array<i64: 2>, scalar_prefetch = 0 : i64, scratch_operands = 1 : i64, tpu.core_type = #tpu.core_type<tc>, window_params = [{transform_indices = @transform_0, window_bounds = array<i64: 1, 16, 64>}, {pipeline_mode = #tpu.pipeline_mode<synchronous>, transform_indices = @transform_1, window_bounds = array<i64: 1, 64>}, {pipeline_mode = #tpu.pipeline_mode<synchronous>, transform_indices = @transform_2, window_bounds = array<i64: 1, 64>}, {pipeline_mode = #tpu.pipeline_mode<synchronous>, transform_indices = @transform_3, window_bounds = array<i64: 576, 128>}, {pipeline_mode = #tpu.pipeline_mode<synchronous>, transform_indices = @transform_4, window_bounds = array<i64: 1, 128>}, {transform_indices = @transform_5, window_bounds = array<i64: 1, 16, 128>}]} {
    %cst = arith.constant 0.000000e+00 : f32
    %0 = vector.broadcast %cst : f32 to vector<18x72xf32>
    %c0 = arith.constant 0 : index
    %c0_0 = arith.constant 0 : index
    %1 = vector.load %arg7[%c0, %c0_0] : memref<18x72xf32, #tpu.memory_space<vmem>>, vector<18x72xf32>
    tpu.vector_store %arg7[%c0, %c0_0], %0 {strides = array<i32>} : memref<18x72xf32, #tpu.memory_space<vmem>>, vector<18x72xf32>,
    %c0_1 = arith.constant 0 : index
    %c0_2 = arith.constant 0 : index
    %c0_3 = arith.constant 0 : index
    %2 = vector.load %arg1[%c0_1, %c0_2, %c0_3] : memref<1x16x64xf32, #tpu.memory_space<vmem>>, vector<1x16x64xf32>
    %3 = vector.shape_cast %2 : vector<1x16x64xf32> to vector<16x64xf32>
    %c0_4 = arith.constant 0 : index
    %c0_5 = arith.constant 0 : index
    %4 = vector.load %arg2[%c0_4, %c0_5] : memref<1x64xf32, #tpu.memory_space<vmem>>, vector<1x64xf32>
    %5 = vector.broadcast %4 : vector<1x64xf32> to vector<16x64xf32>
    %6 = arith.mulf %3, %5 : vector<16x64xf32>
    %c0_6 = arith.constant 0 : index
    %c0_7 = arith.constant 0 : index
    %7 = vector.load %arg3[%c0_6, %c0_7] : memref<1x64xf32, #tpu.memory_space<vmem>>, vector<1x64xf32>
    %8 = vector.broadcast %7 : vector<1x64xf32> to vector<16x64xf32>
    %9 = arith.addf %6, %8 : vector<16x64xf32>
    %cst_8 = arith.constant 0.000000e+00 : f32
    %10 = vector.broadcast %cst_8 : f32 to vector<16x64xf32>
    %11 = arith.cmpf oge, %9, %10 : vector<16x64xf32>
    %cst_9 = arith.constant 2.000000e-01 : f32
    %12 = vector.broadcast %cst_9 : f32 to vector<16x64xf32>
    %13 = arith.mulf %12, %9 : vector<16x64xf32>
    %14 = arith.select %11, %9, %13 : vector<16x64xi1>, vector<16x64xf32>
    %c1 = arith.constant 1 : index
    %c4 = arith.constant 4 : index
    %15 = vector.load %arg7[%c1, %c4] : memref<18x72xf32, #tpu.memory_space<vmem>>, vector<16x64xf32>
    tpu.vector_store %arg7[%c1, %c4], %14 {strides = array<i32>} : memref<18x72xf32, #tpu.memory_space<vmem>>, vector<16x64xf32>,
    %c0_10 = arith.constant 0 : index
    %c0_11 = arith.constant 0 : index
    %16 = vector.load %arg7[%c0_10, %c0_11] : memref<18x72xf32, #tpu.memory_space<vmem>>, vector<16x64xf32>
    %c0_12 = arith.constant 0 : index
    %c4_13 = arith.constant 4 : index
    %17 = vector.load %arg7[%c0_12, %c4_13] : memref<18x72xf32, #tpu.memory_space<vmem>>, vector<16x64xf32>
    %c0_14 = arith.constant 0 : index
    %c8 = arith.constant 8 : index
    %18 = vector.load %arg7[%c0_14, %c8] : memref<18x72xf32, #tpu.memory_space<vmem>>, vector<16x64xf32>
    %c1_15 = arith.constant 1 : index
    %c0_16 = arith.constant 0 : index
    %19 = vector.load %arg7[%c1_15, %c0_16] : memref<18x72xf32, #tpu.memory_space<vmem>>, vector<16x64xf32>
    %c1_17 = arith.constant 1 : index
    %c4_18 = arith.constant 4 : index
    %20 = vector.load %arg7[%c1_17, %c4_18] : memref<18x72xf32, #tpu.memory_space<vmem>>, vector<16x64xf32>
    %c1_19 = arith.constant 1 : index
    %c8_20 = arith.constant 8 : index
    %21 = vector.load %arg7[%c1_19, %c8_20] : memref<18x72xf32, #tpu.memory_space<vmem>>, vector<16x64xf32>
    %c2 = arith.constant 2 : index
    %c0_21 = arith.constant 0 : index
    %22 = vector.load %arg7[%c2, %c0_21] : memref<18x72xf32, #tpu.memory_space<vmem>>, vector<16x64xf32>
    %c2_22 = arith.constant 2 : index
    %c4_23 = arith.constant 4 : index
    %23 = vector.load %arg7[%c2_22, %c4_23] : memref<18x72xf32, #tpu.memory_space<vmem>>, vector<16x64xf32>
    %c2_24 = arith.constant 2 : index
    %c8_25 = arith.constant 8 : index
    %24 = vector.load %arg7[%c2_24, %c8_25] : memref<18x72xf32, #tpu.memory_space<vmem>>, vector<16x64xf32>
    %25 = tpu.concatenate %16, %17, %18, %19, %20, %21, %22, %23, %24 in 1 : vector<16x64xf32>, vector<16x64xf32>, vector<16x64xf32>, vector<16x64xf32>, vector<16x64xf32>, vector<16x64xf32>, vector<16x64xf32>, vector<16x64xf32>, vector<16x64xf32> -> vector<16x576xf32>
    %c0_26 = arith.constant 0 : index
    %c0_27 = arith.constant 0 : index
    %26 = vector.load %arg4[%c0_26, %c0_27] : memref<576x128xf32, #tpu.memory_space<vmem>>, vector<576x128xf32>
    %cst_28 = arith.constant dense<0.000000e+00> : vector<16x128xf32>
    %27 = tpu.matmul %25, %26, %cst_28 {dimension_numbers = #tpu.dot_dimension_numbers<[1], [0], [0], [1], [0, 0, 1, 1], [], []>} : vector<16x576xf32>, vector<576x128xf32>, vector<16x128xf32> -> vector<16x128xf32>
    %c0_29 = arith.constant 0 : index
    %c0_30 = arith.constant 0 : index
    %28 = vector.load %arg5[%c0_29, %c0_30] : memref<1x128xf32, #tpu.memory_space<vmem>>, vector<1x128xf32>
    %29 = vector.broadcast %28 : vector<1x128xf32> to vector<16x128xf32>
    %30 = arith.addf %27, %29 : vector<16x128xf32>
    %c0_31 = arith.constant 0 : index
    %c0_32 = arith.constant 0 : index
    %c0_33 = arith.constant 0 : index
    %31 = vector.load %arg6[%c0_31, %c0_32, %c0_33] : memref<1x16x128xf32, #tpu.memory_space<vmem>>, vector<1x16x128xf32>
    %32 = vector.shape_cast %31 : vector<1x16x128xf32> to vector<16x128xf32>
    %33 = vector.shape_cast %30 : vector<16x128xf32> to vector<1x16x128xf32>
    tpu.vector_store %arg6[%c0_31, %c0_32, %c0_33], %33 {strides = array<i32>} : memref<1x16x128xf32, #tpu.memory_space<vmem>>, vector<1x16x128xf32>,
    return
  }
  func.func @transform_0(%arg0: i32) -> (i32, i32, i32) {
    %c0_i32 = arith.constant 0 : i32
    %c0_i32_0 = arith.constant 0 : i32
    %c0_i32_1 = arith.constant 0 : i32
    return %arg0, %c0_i32, %c0_i32_0 : i32, i32, i32
  }
  func.func @transform_1(%arg0: i32) -> (i32, i32) {
    %c0_i32 = arith.constant 0 : i32
    %c0_i32_0 = arith.constant 0 : i32
    %c0_i32_1 = arith.constant 0 : i32
    return %c0_i32, %c0_i32_0 : i32, i32
  }
  func.func @transform_2(%arg0: i32) -> (i32, i32) {
    %c0_i32 = arith.constant 0 : i32
    %c0_i32_0 = arith.constant 0 : i32
    %c0_i32_1 = arith.constant 0 : i32
    return %c0_i32, %c0_i32_0 : i32, i32
  }
  func.func @transform_3(%arg0: i32) -> (i32, i32) {
    %c0_i32 = arith.constant 0 : i32
    %c0_i32_0 = arith.constant 0 : i32
    %c0_i32_1 = arith.constant 0 : i32
    return %c0_i32, %c0_i32_0 : i32, i32
  }
  func.func @transform_4(%arg0: i32) -> (i32, i32) {
    %c0_i32 = arith.constant 0 : i32
    %c0_i32_0 = arith.constant 0 : i32
    %c0_i32_1 = arith.constant 0 : i32
    return %c0_i32, %c0_i32_0 : i32, i32
  }
  func.func @transform_5(%arg0: i32) -> (i32, i32, i32) {
    %c0_i32 = arith.constant 0 : i32
    %c0_i32_0 = arith.constant 0 : i32
    %c0_i32_1 = arith.constant 0 : i32
    return %arg0, %c0_i32, %c0_i32_0 : i32, i32, i32
  }
}

</mosaic_0001>

<bundles_post_ra>
// kernel: tpu_custom_call.1
= control target key start
LH: loop header
LB: loop body
LE: loop exit
PB: predicated region body
PF: predicated region fallthrough
CT: control target
= control target key end

     0   :  { %10 = vsyncpa [#allocation4], 0  ;;  %s1460_s0 = inlined_call_operand.hbm [shape: f32[2,16,64], index: 0, kind: input, shape index: {}]   ;;  %s1461_s1 = inlined_call_operand.vmem [shape: f32[1,64], index: 1, kind: input, shape index: {}]   ;;  %s1462_s2 = inlined_call_operand.vmem [shape: f32[1,64], index: 2, kind: input, shape index: {}]   ;;  %s1463_s3 = inlined_call_operand.hbm [shape: f32[576,128], index: 3, kind: input, shape index: {}]   ;;  %s1464_s4 = inlined_call_operand.vmem [shape: f32[1,128], index: 4, kind: input, shape index: {}]   ;;  %s1465_s5 = inlined_call_operand.hbm [shape: f32[2,16,128], index: 5, kind: output, shape index: {}]  }
   0x1   :  { %12 = vsyncpa [#allocation4 + $0x1], 0 }
   0x2   :  { %13 = vsyncpa [#allocation7], 0 }
   0x3   :  { %14 = vsyncpa [#allocation5], 0 }
   0x4   :  { %16 = vsyncpa [#allocation5 + $0x1], 0  ;;  %s1228_s18 = smov 0   ;;  %s1230_s19 = smov 0  }
   0x5   :  { %s1232_s20 = smov 0   ;;  %s1234_s21 = smov 0  }
   0x6 LB: > { %s1249_s22 = sadd.s32 4294967295, %s1182_s21   ;;  %s768_s23 = sadd.s32 4294967294, %s1182_s21   ;;  %s1182_s21 = sphi %s1234_s21, %s1485_s21   ;;  %s1178_s20 = sphi %s1232_s20, %s1484_s20   ;;  %s1174_s19 = sphi %s1230_s19, %s1483_s19   ;;  %s1170_s18 = sphi %s1228_s18, %s1482_s18  }
   0x7   : > { %p42_p0 = scmp.ne.s32.totalorder %s1174_s19, %s1170_s18  ;;  %p1466_p1 = scmp.eq.s32.totalorder %s1249_s22, 0 }
   0x8   : > { %p156_p3 = scmp.eq.s32.totalorder %s768_s23, 1  ;;  %p769_p5 = scmp.ge.s32.totalorder %s1182_s21, 1 }
   0x9   : > { %p1258_p4 = por %p1466_p1, %p42_p0  ;;  %p163_p7 = scmp.lt.s32.totalorder %s1182_s21, 3 }
   0xa   : > { %p1263_p6 = por %p156_p3, %p42_p0  ;;  %s1184_s27 = smov [#allocation6]  }
   0xb   : > { %s1469_s24 = scalar_select %p1258_p4, 1, 0 }
   0xc   : > { %s1470_s25 = scalar_select %p1263_p6, 1, 0 }
   0xd   : > { %p1268_p8 = pnand %p769_p5, %p163_p7  ;;  %s181_s28 = sshll.u32 %s1184_s27, 4  ;;  %s1272_s28 = int_to_ptr.vmem [resolvable:$true] %s181_s28 }
   0xe   : > { %s1284_s30 = sadd.s32 1, %s1182_s21   ;;  %s29_s6 = sadd.s32 1, %s1178_s20 }
   0xf   : > { %s1471_s26 = scalar_select %p1268_p8, 1, 0 }
  0x10   : > { %p984_p9 = pneg %p1268_p8  ;;  %s26_s7 = ssub.s32 %s1182_s21, %s1284_s30 }
  0x11   : > { %s1054_s10 = scalar_lea.hbm %s1463_s3, 9216 }
  0x12   : > { %p1279_p11 = pnand %p984_p9, %p1466_p1  ;;  %p1055_p12 = scmp.ne.s32.totalorder %s1463_s3, %s1054_s10 }
  0x13   : > { %p1061_p5 = scmp.lt.u32.totalorder %s1054_s10, %s1463_s3 }
  0x14   : > { %p1056_p13 = pneg %p1279_p11 }
  0x16   : > { %p1057_p0 = pnand %p1056_p13, %p1055_p12 }
  0x18   : > { %p1058_p3 = pneg %p1057_p0 }
  0x1a   : > { %p1063_p7 = pnand %p1061_p5, %p1058_p3 }
  0x1c   : > { %1066 = shalt.err (!%p1063_p7)
}
  0x1d   : > { %s1067_s15 = scalar_lea.vmem %s1272_s28, 9216  ;;  %p1075_p2 = scmp.lt.s32.totalorder %s1272_s28, %s1272_s28 }
  0x1e   : > { %p1068_p9 = scmp.ne.s32.totalorder %s1272_s28, %s1067_s15  ;;  %p1076_p6 = scmp.lt.s32.totalorder %s1067_s15, %s1067_s15 }
  0x20   : > { %p1070_p10 = pnand %p1068_p9, %p1056_p13  ;;  %p1077_p4 = por %p1076_p6, %p1075_p2 }
  0x22   : > { %p1071_p1 = pneg %p1070_p10 }
  0x24   : > { %p1078_p8 = pnand %p1077_p4, %p1071_p1 }
  0x26   : > { %1081 = shalt.err (!%p1078_p8)
}
  0x27   : > { %s1185_s16 = smov 128   ;;  %s1186_s17 = smov 8  }
  0x28   : > { %987 = dma.hbm_to_vmem [thread:$0]  (!%p1279_p11), %s1463_s3, 9216, %s1272_s28, [#allocation7], %s1185_s16, %s1185_s16, %s1186_s17  }
  0x29   : > { %p27_p1 = scmp.eq.s32.totalorder %s26_s7, 0  ;;  %p36_p2 = scmp.ne.s32.totalorder %s1178_s20, %s1174_s19 }
  0x2a   : > { %p37_p4 = scmp.eq.s32.totalorder %s1182_s21, 0  ;;  %p997_p6 = scmp.lt.s32.totalorder %s1182_s21, 2 }
  0x2b   : > { %s1318_s8 = scalar_select %p27_p1, %s1178_s20, %s29_s6  }
  0x2c   : > { %p38_p8 = por %p37_p4, %p36_p2  ;;  %p1473_p10 = scmp.eq.s32.totalorder %s1249_s22, 1 }
  0x2d   : > { %s198_s29 = sand.u32 1, %s1178_s20   ;;  %s789_s10 = sshll.u32 %s1182_s21, 8 }
  0x2e   : > { %p1322_p12 = por %p1473_p10, %p36_p2  ;;  %s772_s11 = sshll.u32 %s198_s29, 4 }
  0x2f   : > { %s1331_s14 = scalar_lea.hbm %s1460_s0, %s789_s10  ;;  %s202_s28 = scalar_lea.vmem [#allocation3], %s772_s11 }
  0x30   : > { %s209_s6 = sshll.u32 %s202_s28, 4  ;;  %p1333_p11 = pnand %p997_p6, %p38_p8  ;;  %s1337_s6 = int_to_ptr.vmem [resolvable:$true] %s209_s6 }
  0x31   : > { %s1339_s15 = scalar_lea.sflag [#allocation4], %s198_s29  ;;  %s1082_s23 = scalar_lea.hbm %s1331_s14, 256 }
  0x32   : > { %p1083_p13 = scmp.ne.s32.totalorder %s1331_s14, %s1082_s23  ;;  %p1084_p0 = pneg %p1333_p11 }
  0x33   : > { %s1087_s11 = scalar_lea.hbm %s1460_s0, 512  ;;  %p1088_p7 = scmp.lt.u32.totalorder %s1331_s14, %s1460_s0 }
  0x34   : > { %p1085_p3 = pnand %p1084_p0, %p1083_p13  ;;  %p1089_p9 = scmp.lt.u32.totalorder %s1087_s11, %s1082_s23 }
  0x35   : > { %p1091_p2 = scmp.lt.u32.totalorder %s1082_s23, %s1331_s14 }
  0x36   : > { %p1086_p5 = pneg %p1085_p3  ;;  %p1090_p1 = por %p1089_p9, %p1088_p7 }
  0x38   : > { %p1092_p4 = por %p1091_p2, %p1090_p1 }
  0x3a   : > { %p1093_p6 = pnand %p1092_p4, %p1086_p5 }
  0x3c   : > { %1096 = shalt.err (!%p1093_p6)
}
  0x3d   : > { %s1097_s29 = scalar_lea.vmem %s1337_s6, 256  ;;  %s1187_s28 = smov [#allocation3]  }
  0x3e   : > { %p1098_p8 = scmp.ne.s32.totalorder %s1337_s6, %s1097_s29  ;;  %s1102_s27 = sshll.u32 %s1187_s28, 4  ;;  %s1103_s27 = int_to_ptr.vmem [resolvable:$false] %s1102_s27 }
  0x3f   : > { %s1104_s10 = scalar_lea.vmem %s1103_s27, 512  ;;  %p1105_p3 = scmp.lt.s32.totalorder %s1337_s6, %s1103_s27 }
  0x40   : > { %p1100_p10 = pnand %p1098_p8, %p1084_p0  ;;  %p1106_p7 = scmp.lt.s32.totalorder %s1104_s10, %s1097_s29 }
  0x42   : > { %p1101_p13 = pneg %p1100_p10  ;;  %p1107_p9 = por %p1106_p7, %p1105_p3 }
  0x44   : > { %p1108_p1 = pnand %p1107_p9, %p1101_p13 }
  0x46   : > { %1111 = shalt.err (!%p1108_p1)
}
  0x47   : > { %991 = dma.hbm_to_vmem [thread:$0]  (!%p1333_p11), %s1331_s14, 256, %s1337_s6, %s1339_s15, %s1185_s16, %s1185_s16, %s1186_s17  }
  0x48   : > { %p1476_p0 = scmp.ne.s32.totalorder %s1471_s26, 0 }
  0x49   : > { %s1373_s23 = sand.u32 (!%p1476_p0), 1, %s1174_s19   ;;  %p1477_p5 = scmp.ne.s32.totalorder (!%p1476_p0), %s1469_s24, 0 }
  0x4a   : > { %221 = sbr.rel (%p1476_p0) target bundleno = 586 (0x24a), region = 40  ;;  %s776_s11 = sshll.u32 (!%p1476_p0), %s1373_s23, 4 }
  0x4b   : > { %s224_s12 = scalar_lea.sflag (!%p1476_p0), [#allocation4], %s1373_s23  ;;  %s227_s7 = scalar_lea.vmem (!%p1476_p0), [#allocation3], %s776_s11 }
  0x51   : > { %1157 = dma.done.wait (%p1477_p5), %s224_s12, 256  }
  0x52   : > { %1159 = vsyncadd (%p1477_p5), %s224_s12, 4294967040  ;;  %p1478_p11 = scmp.eq.s32.totalorder %s1249_s22, 0 }
  0x54   : > { %1161 = dma.done.wait (%p1478_p11), [#allocation7], 9216   ;;  %p1479_p2 = pmov %p1478_p11 }
  0x55   : > { %vm258_vm0 = vcmask 588800   ;;  %v1188_v0 = vmov 0.0   ;;  %vm261_vm1 = vcmask 582656   ;;  %v263_v1 = vld [vmem:[%s227_s7] sm:$0xff]  ;;  %v779_v2 = vld [vmem:[%s1461_s1] ss:$0 sm:$0xff] }
  0x56   : > { %1163 = vsyncadd (%p1479_p2), [#allocation7], 4294958080  ;;  %259 = vst.msk [vmem:[#allocation2] sm:$0xff] %vm258_vm0, %v1188_v0  ;;  %v780_v3 = vld [vmem:[%s1462_s2] ss:$0 sm:$0xff]  ;;  %v272_v4 = vmul.f32 %v779_v2, %v263_v1  ;;  %s1189_s14 = smov 4  }
  0x57   : > { %260 = vst.msk [vmem:[#allocation2 + $0x8] sm:$0xff] %vm258_vm0, %v1188_v0  ;;  %v264_v5 = vld [vmem:[%s227_s7 + $0x8] sm:$0xff]  ;;  %v377_v13 = vld [vmem:[#allocation6 + $0x80] sm:$0xff]  ;;  %v379_v22 = vld [vmem:[#allocation6 + $0x90] sm:$0xff]  ;;  %vm297_vm4 = vcmask 556064   ;;  %s1190_s6 = smov 120  }
  0x58   : > { %262 = vst.msk [vmem:[#allocation2 + $0x10] sm:$0x3] %vm261_vm1, %v1188_v0  ;;  %v273_v6 = vmul.f32 %v779_v2, %v264_v5  ;;  %v281_v7 = vadd.f32 %v780_v3, %v272_v4  ;;  %v378_v14 = vld [vmem:[#allocation6 + $0x88] sm:$0xff]  ;;  %v361_v15 = vld [vmem:[#allocation6] sm:$0xff]  ;;  %v380_v23 = vld [vmem:[#allocation6 + $0x98] sm:$0xff]  ;;  %s1191_s15 = smov 64  }
  0x59   : > { %v896_v16 = vpack.c.bf16 %v378_v14, %v377_v13  ;;  %v362_v17 = vld [vmem:[#allocation6 + $0x8] sm:$0xff]  ;;  %v409_v18 = vld [vmem:[#allocation6 + $0x180] sm:$0xff]  ;;  %v900_v25 = vpack.c.bf16 %v380_v23, %v379_v22  ;;  %v363_v27 = vld [vmem:[#allocation6 + $0x10] sm:$0xff]  ;;  %s1192_s13 = smov 60   ;;  %s1193_s29 = smov 124   ;;  %vm352_vm5 = vcmask 523264  }
  0x5a   : > { %v282_v8 = vadd.f32 %v780_v3, %v273_v6  ;;  %vm283_vm2 = vcmp.ge.f32.partialorder %v281_v7, 0.0  ;;  %v285_v9 = vmul.f32 0.2, %v281_v7  ;;  %v410_v19 = vld [vmem:[#allocation6 + $0x188] sm:$0xff]  ;;  %v898_v20 = vpack.c.bf16 %v362_v17, %v361_v15  ;;  %v393_v24 = vld [vmem:[#allocation6 + $0x100] sm:$0xff]  ;;  %v364_v28 = vld [vmem:[#allocation6 + $0x18] sm:$0xff] }
  0x5b   : > { %v928_v21 = vpack.c.bf16 %v410_v19, %v409_v18  ;;  %897 = vmatprep.subr.bf16.mxu0 %v896_v16  ;;  %v394_v26 = vld [vmem:[#allocation6 + $0x108] sm:$0xff]  ;;  %v902_v30 = vpack.c.bf16 %v364_v28, %v363_v27  ;;  %v411_v31 = vld [vmem:[#allocation6 + $0x190] sm:$0xff]  ;;  %v412_v32 = vld [vmem:[#allocation6 + $0x198] sm:$0xff]  ;;  %s1194_s28 = smov 56   ;;  %s257_s12 = scalar_lea.vmem [#allocation8], %s776_s11 }
  0x5c   : > { %vm284_vm3 = vcmp.ge.f32.partialorder %v282_v8, 0.0  ;;  %v286_v10 = vmul.f32 0.2, %v282_v8  ;;  %v287_v11 = vsel %vm283_vm2, %v281_v7, %v285_v9  ;;  %899 = vmatpush3.bf16.msra.mxu0 %v898_v20  ;;  %v930_v29 = vpack.c.bf16 %v394_v26, %v393_v24  ;;  %v381_v33 = vld [vmem:[#allocation6 + $0xa0] sm:$0xff]  ;;  %v382_v35 = vld [vmem:[#allocation6 + $0xa8] sm:$0xff]  ;;  %v395_v36 = vld [vmem:[#allocation6 + $0x110] sm:$0xff] }
  0x5d   : > { %291 = vrot.lane.b32.xlu0 %v287_v11, %s1189_s14  ;;  %929 = vmatprep.subr.bf16.mxu1 %v928_v21  ;;  %v932_v34 = vpack.c.bf16 %v412_v32, %v411_v31  ;;  %v396_v37 = vld [vmem:[#allocation6 + $0x118] sm:$0xff]  ;;  %v904_v38 = vpack.c.bf16 %v382_v35, %v381_v33  ;;  %v365_v40 = vld [vmem:[#allocation6 + $0x20] sm:$0xff]  ;;  %v366_v41 = vld [vmem:[#allocation6 + $0x28] sm:$0xff]  ;;  %s685_s7 = sshll.u32 %s257_s12, 4  ;;  %s790_s26 = sshll.u32 %s1249_s22, 8  ;;  %s1411_s7 = int_to_ptr.vmem [resolvable:$true] %s685_s7 }
  0x5e   : > { %v288_v12 = vsel %vm284_vm3, %v282_v8, %v286_v10  ;;  %901 = vmatprep.subr.bf16.mxu0 %v900_v25  ;;  %931 = vmatpush3.bf16.msra.mxu1 %v930_v29  ;;  %v934_v39 = vpack.c.bf16 %v396_v37, %v395_v36  ;;  %v413_v42 = vld [vmem:[#allocation6 + $0x1a0] sm:$0xff]  ;;  %v414_v43 = vld [vmem:[#allocation6 + $0x1a8] sm:$0xff]  ;;  %v383_v44 = vld [vmem:[#allocation6 + $0xb0] sm:$0xff]  ;;  %v906_v46 = vpack.c.bf16 %v366_v41, %v365_v40  ;;  %s1416_s24 = scalar_lea.hbm %s1465_s5, %s790_s26  ;;  %s672_s11 = scalar_lea.sflag [#allocation5], %s1373_s23 }
  0x5f   : > { %933 = vmatprep.subr.bf16.mxu1 %v932_v34  ;;  %v384_v45 = vld [vmem:[#allocation6 + $0xb8] sm:$0xff]  ;;  %v936_v47 = vpack.c.bf16 %v414_v43, %v413_v42  ;;  %v397_v48 = vld [vmem:[#allocation6 + $0x120] sm:$0xff]  ;;  %v398_v49 = vld [vmem:[#allocation6 + $0x128] sm:$0xff]  ;;  %s1195_s22 = smov [#allocation8]  }
  0x60   : > { %903 = vmatpush3.bf16.msra.mxu0 %v902_v30  ;;  %v367_v50 = vld [vmem:[#allocation6 + $0x30] sm:$0xff]  ;;  %v908_v51 = vpack.c.bf16 %v384_v45, %v383_v44  ;;  %v368_v52 = vld [vmem:[#allocation6 + $0x38] sm:$0xff]  ;;  %v938_v55 = vpack.c.bf16 %v398_v49, %v397_v48  ;;  %v385_v56 = vld [vmem:[#allocation6 + $0xc0] sm:$0xff] }
  0x61   : > { %293 = vrot.lane.b32.xlu0 %v288_v12, %s1189_s14  ;;  %905 = vmatprep.subr.bf16.mxu0 %v904_v38  ;;  %v415_v53 = vld [vmem:[#allocation6 + $0x1b0] sm:$0xff]  ;;  %v416_v54 = vld [vmem:[#allocation6 + $0x1b8] sm:$0xff]  ;;  %v386_v57 = vld [vmem:[#allocation6 + $0xc8] sm:$0xff]  ;;  %v910_v61 = vpack.c.bf16 %v368_v52, %v367_v50  ;;  %s1112_s14 = scalar_lea.vmem %s1411_s7, 256 }
  0x62   : > { %935 = vmatpush3.bf16.msra.mxu1 %v934_v39  ;;  %v940_v58 = vpack.c.bf16 %v416_v54, %v415_v53  ;;  %v399_v59 = vld [vmem:[#allocation6 + $0x130] sm:$0xff]  ;;  %v400_v60 = vld [vmem:[#allocation6 + $0x138] sm:$0xff]  ;;  %v417_v62 = vld [vmem:[#allocation6 + $0x1c0] sm:$0xff]  ;;  %v912_v0 = vpack.c.bf16 %v386_v57, %v385_v56  ;;  %p1113_p4 = scmp.ne.s32.totalorder %s1411_s7, %s1112_s14 }
  0x63   : > { %937 = vmatprep.subr.bf16.mxu1 %v936_v47  ;;  %v418_v63 = vld [vmem:[#allocation6 + $0x1c8] sm:$0xff]  ;;  %v369_v1 = vld [vmem:[#allocation6 + $0x40] sm:$0xff]  ;;  %v942_v3 = vpack.c.bf16 %v400_v60, %v399_v59  ;;  %v387_v4 = vld [vmem:[#allocation6 + $0xd0] sm:$0xff] }
  0x64   : > { %907 = vmatpush3.bf16.msra.mxu0 %v906_v46  ;;  %v370_v2 = vld [vmem:[#allocation6 + $0x48] sm:$0xff]  ;;  %v388_v5 = vld [vmem:[#allocation6 + $0xd8] sm:$0xff]  ;;  %v944_v6 = vpack.c.bf16 %v418_v63, %v417_v62  ;;  %v401_v7 = vld [vmem:[#allocation6 + $0x140] sm:$0xff]  ;;  %p1114_p6 = pnand %p1113_p4, %p1322_p12 }
  0x65   : > { %909 = vmatprep.subr.bf16.mxu0 %v908_v51  ;;  %v402_v8 = vld [vmem:[#allocation6 + $0x148] sm:$0xff]  ;;  %v914_v9 = vpack.c.bf16 %v370_v2, %v369_v1  ;;  %v419_v10 = vld [vmem:[#allocation6 + $0x1d0] sm:$0xff]  ;;  %v420_v11 = vld [vmem:[#allocation6 + $0x1d8] sm:$0xff]  ;;  %v916_v12 = vpack.c.bf16 %v388_v5, %v387_v4 }
  0x66   : > { %939 = vmatpush3.bf16.msra.mxu1 %v938_v55  ;;  %v371_v13 = vld [vmem:[#allocation6 + $0x50] sm:$0xff]  ;;  %v372_v14 = vld [vmem:[#allocation6 + $0x58] sm:$0xff]  ;;  %v946_v15 = vpack.c.bf16 %v402_v8, %v401_v7  ;;  %v948_v16 = vpack.c.bf16 %v420_v11, %v419_v10  ;;  %v389_v18 = vld [vmem:[#allocation6 + $0xe0] sm:$0xff]  ;;  %p1115_p8 = pneg %p1114_p6 }
  0x67   : > { %941 = vmatprep.subr.bf16.mxu1 %v940_v58  ;;  %v918_v17 = vpack.c.bf16 %v372_v14, %v371_v13  ;;  %v390_v19 = vld [vmem:[#allocation6 + $0xe8] sm:$0xff]  ;;  %v403_v20 = vld [vmem:[#allocation6 + $0x150] sm:$0xff]  ;;  %v404_v22 = vld [vmem:[#allocation6 + $0x158] sm:$0xff] }
  0x68   : > { %911 = vmatpush3.bf16.msra.mxu0 %v910_v61  ;;  %v920_v21 = vpack.c.bf16 %v390_v19, %v389_v18  ;;  %v373_v23 = vld [vmem:[#allocation6 + $0x60] sm:$0xff]  ;;  %v374_v24 = vld [vmem:[#allocation6 + $0x68] sm:$0xff]  ;;  %v950_v25 = vpack.c.bf16 %v404_v22, %v403_v20  ;;  %v391_v30 = vld [vmem:[#allocation6 + $0xf0] sm:$0xff] }
  0x69   : > { %913 = vmatprep.subr.bf16.mxu0 %v912_v0  ;;  %v922_v26 = vpack.c.bf16 %v374_v24, %v373_v23  ;;  %v421_v27 = vld [vmem:[#allocation6 + $0x1e0] sm:$0xff]  ;;  %v422_v28 = vld [vmem:[#allocation6 + $0x1e8] sm:$0xff]  ;;  %v392_v31 = vld [vmem:[#allocation6 + $0xf8] sm:$0xff] }
  0x6a   : > { %943 = vmatpush3.bf16.msra.mxu1 %v942_v3  ;;  %v952_v29 = vpack.c.bf16 %v422_v28, %v421_v27  ;;  %v405_v32 = vld [vmem:[#allocation6 + $0x160] sm:$0xff]  ;;  %v924_v33 = vpack.c.bf16 %v392_v31, %v391_v30  ;;  %v406_v34 = vld [vmem:[#allocation6 + $0x168] sm:$0xff]  ;;  %v375_v35 = vld [vmem:[#allocation6 + $0x70] sm:$0xff] }
  0x6b   : > { %945 = vmatprep.subr.bf16.mxu1 %v944_v6  ;;  %v376_v36 = vld [vmem:[#allocation6 + $0x78] sm:$0xff]  ;;  %v954_v38 = vpack.c.bf16 %v406_v34, %v405_v32  ;;  %v423_v40 = vld [vmem:[#allocation6 + $0x1f0] sm:$0xff]  ;;  %v425_v45 = vld [vmem:[#allocation6 + $0x200] sm:$0xff] }
  0x6c   : > { %915 = vmatpush3.bf16.msra.mxu0 %v914_v9  ;;  %v926_v39 = vpack.c.bf16 %v376_v36, %v375_v35  ;;  %v424_v41 = vld [vmem:[#allocation6 + $0x1f8] sm:$0xff]  ;;  %v407_v43 = vld [vmem:[#allocation6 + $0x170] sm:$0xff]  ;;  %v426_v47 = vld [vmem:[#allocation6 + $0x208] sm:$0xff] }
  0x6d   : > { %917 = vmatprep.subr.bf16.mxu0 %v916_v12  ;;  %v956_v42 = vpack.c.bf16 %v424_v41, %v423_v40  ;;  %v408_v44 = vld [vmem:[#allocation6 + $0x178] sm:$0xff]  ;;  %v960_v49 = vpack.c.bf16 %v426_v47, %v425_v45  ;;  %v427_v61 = vld [vmem:[#allocation6 + $0x210] sm:$0xff]  ;;  %v429_v6 = vld [vmem:[#allocation6 + $0x220] sm:$0xff] }
  0x6e   : > { %947 = vmatpush3.bf16.msra.mxu1 %v946_v15  ;;  %v958_v46 = vpack.c.bf16 %v408_v44, %v407_v43  ;;  %v428_v62 = vld [vmem:[#allocation6 + $0x218] sm:$0xff]  ;;  %v430_v7 = vld [vmem:[#allocation6 + $0x228] sm:$0xff]  ;;  %v431_v13 = vld [vmem:[#allocation6 + $0x230] sm:$0xff] }
  0x6f   : > { %949 = vmatprep.subr.bf16.mxu1 %v948_v16  ;;  %v964_v3 = vpack.c.bf16 %v428_v62, %v427_v61  ;;  %v968_v11 = vpack.c.bf16 %v430_v7, %v429_v6  ;;  %v432_v14 = vld [vmem:[#allocation6 + $0x238] sm:$0xff]  ;;  %v781_v28 = vld [vmem:[%s1464_s4] ss:$0 sm:$0xff] }
  0x70   : > { %919 = vmatpush3.bf16.msra.mxu0 %v918_v17  ;;  %v972_v19 = vpack.c.bf16 %v432_v14, %v431_v13 }
  0x71   : > { %921 = vmatprep.subr.bf16.mxu0 %v920_v21 }
  0x72   : > { %951 = vmatpush3.bf16.msra.mxu1 %v950_v25 }
  0x73   : > { %953 = vmatprep.subr.bf16.mxu1 %v952_v29 }
  0x74   : > { %923 = vmatpush3.bf16.msra.mxu0 %v922_v26 }
  0x75   : > { %925 = vmatprep.subr.bf16.mxu0 %v924_v33 }
  0x76   : > { %955 = vmatpush3.bf16.msra.mxu1 %v954_v38 }
  0x77   : > { %957 = vmatprep.subr.bf16.mxu1 %v956_v42 }
  0x78   : > { %927 = vmatpush3.bf16.msra.mxu0 %v926_v39 }
  0x79   : > { %961 = vmatprep.subr.bf16.mxu0 %v960_v49 }
  0x7a   : > { %959 = vmatpush3.bf16.msra.mxu1 %v958_v46 }
  0xcf   : > { %v292_v37 = vpop.permute.xlu0 %291 }
  0xd0   : > { %298 = vst.msk [vmem:[#allocation2 + $0x1] sm:$0xff] %vm297_vm4, %v292_v37 }
  0xd3   : > { %v294_v48 = vpop.permute.xlu0 %293 }
  0xd4   : > { %299 = vst.msk [vmem:[#allocation2 + $0x9] sm:$0xff] %vm297_vm4, %v294_v48 }
  0xd7   : > { %v300_v50 = vld [vmem:[#allocation2] sm:$0xff] }
  0xd8   : > { %314 = vrot.lane.b32.xlu1 %v300_v50, %s1190_s6  ;;  %v302_v51 = vld [vmem:[#allocation2 + $0x1] sm:$0xff] }
  0xdb   : > { %v304_v52 = vld [vmem:[#allocation2 + $0x2] sm:$0xff]  ;;  %v305_v55 = vld [vmem:[#allocation2 + $0xa] sm:$0xff] }
  0xdc   : > { %322 = vrot.lane.b32.xlu1 %v302_v51, %s1191_s15  ;;  %v1044_v53 = vpack.i.bf16 %v304_v52, %v300_v50  ;;  %v301_v54 = vld [vmem:[#allocation2 + $0x8] sm:$0xff] }
  0xdd   : > { %v303_v56 = vld [vmem:[#allocation2 + $0x9] sm:$0xff]  ;;  %v1049_v57 = vpack.i.bf16 %v305_v55, %v301_v54 }
  0xde   : > { %1045 = vrot.lane.b32.xlu0 %v1044_v53, %s1192_s13 }
  0xe0   : > { %328 = vrot.lane.b32.xlu1 %v302_v51, %s1193_s29 }
  0xe2   : > { %334 = vrot.lane.b32.xlu0 %v302_v51, %s1194_s28 }
  0xe4   : > { %316 = vrot.lane.b32.xlu1 %v301_v54, %s1190_s6 }
  0xe6   : > { %324 = vrot.lane.b32.xlu0 %v303_v56, %s1191_s15 }
  0xe8   : > { %1050 = vrot.lane.b32.xlu1 %v1049_v57, %s1192_s13 }
  0xea   : > { %330 = vrot.lane.b32.xlu0 %v303_v56, %s1193_s29 }
  0xec   : > { %336 = vrot.lane.b32.xlu1 %v303_v56, %s1194_s28 }
  0xee   : > { %348 = vrot.lane.b32.xlu0 %v304_v52, %s1190_s6 }
  0xf0   : > { %350 = vrot.lane.b32.xlu1 %v305_v55, %s1190_s6  ;;  %s1116_s6 = sshll.u32 %s1195_s22, 4  ;;  %s1117_s6 = int_to_ptr.vmem [resolvable:$false] %s1116_s6 }
  0xf1   : > { %s1118_s15 = scalar_lea.vmem %s1117_s6, 512  ;;  %p1119_p10 = scmp.lt.s32.totalorder %s1411_s7, %s1117_s6 }
  0xf2   : > { %p1120_p13 = scmp.lt.s32.totalorder %s1118_s15, %s1112_s14 }
  0xf4   : > { %p1121_p3 = por %p1120_p13, %p1119_p10 }
  0xf6   : > { %p1122_p7 = pnand %p1121_p3, %p1115_p8 }
 0x14a   : > { %v315_v58 = vpop.permute.xlu1 %314 }
 0x14e   : > { %v323_v59 = vpop.permute.xlu1 %322 }
 0x14f   : > { %v355_v60 = vsel %vm352_vm5, %v315_v58, %v323_v59 }
 0x150   : > { %v1046_v63 = vpop.permute.xlu0 %1045  ;;  %508 = vmatprep.mubr.f32.mxu0 %v355_v60 }
 0x151   : > { %v1048_v0 = vunpack.i.h.bf16 %v1046_v63  ;;  %v1047_v1 = vunpack.i.l.bf16 %v1046_v63 }
 0x152   : > { %v329_v2 = vpop.permute.xlu1 %328 }
 0x153   : > { %v353_v4 = vsel %vm352_vm5, %v300_v50, %v1047_v1  ;;  %v359_v5 = vsel %vm352_vm5, %v304_v52, %v1048_v0 }
 0x154   : > { %v335_v8 = vpop.permute.xlu0 %334  ;;  %509 = vmatmul.mubr.f32.vlgmr.msra.gmra.mrb[0].mxu0 %v353_v4  ;;  %583 = vmatprep.mubr.f32.mxu1 %v359_v5 }
 0x155   : > { %963 = vmatpush3.bf16.msra.mxu0 %v960_v49  ;;  %v357_v9 = vsel %vm352_vm5, %v329_v2, %v335_v8 }
 0x156   : > { %584 = vmatmul.mubr.f32.vlgmr.msra.gmra.mrb[0].mxu1 %v357_v9  ;;  %v317_v10 = vpop.permute.xlu1 %316  ;;  %965 = vmatprep.subr.bf16.mxu0 %v964_v3 }
 0x158   : > { %v325_v12 = vpop.permute.xlu0 %324 }
 0x159   : > { %967 = vmatpush3.bf16.msra.mxu0 %v964_v3  ;;  %v356_v15 = vsel %vm352_vm5, %v317_v10, %v325_v12 }
 0x15a   : > { %513 = vmatprep.mubr.f32.mxu0 %v356_v15  ;;  %v1051_v16 = vpop.permute.xlu1 %1050  ;;  %969 = vmatprep.subr.bf16.mxu0 %v968_v11 }
 0x15b   : > { %v1053_v17 = vunpack.i.h.bf16 %v1051_v16  ;;  %v1052_v18 = vunpack.i.l.bf16 %v1051_v16 }
 0x15c   : > { %v331_v20 = vpop.permute.xlu0 %330 }
 0x15d   : > { %971 = vmatpush3.bf16.msra.mxu0 %v968_v11  ;;  %v354_v21 = vsel %vm352_vm5, %v301_v54, %v1052_v18  ;;  %v360_v22 = vsel %vm352_vm5, %v305_v55, %v1053_v17 }
 0x15e   : > { %v337_v23 = vpop.permute.xlu1 %336  ;;  %514 = vmatmul.mubr.f32.gmra.mrb[2].mxu0 %v354_v21  ;;  %588 = vmatprep.mubr.f32.mxu1 %v360_v22 }
 0x15f   : > { %973 = vmatprep.subr.bf16.mxu0 %v972_v19  ;;  %v358_v24 = vsel %vm352_vm5, %v331_v20, %v337_v23 }
 0x160   : > { %v349_v25 = vpop.permute.xlu0 %348  ;;  %589 = vmatmul.mubr.f32.gmra.mrb[2].mxu1 %v358_v24 }
 0x161   : > { %975 = vmatpush3.bf16.msra.mxu0 %v972_v19  ;;  %893 = vmatprep.mubr.msk.f32.mxu0 %vm352_vm5, %v349_v25 }
 0x162   : > { %v351_v26 = vpop.permute.xlu1 %350 }
 0x164   : > { %894 = vmatmul.mubr.msk.f32.vlgmr.msra.gmra.mrb[4].mxu0 %vm352_vm5, %v351_v26 }
 0x227   : > { %v823_v27 = vpop.f32.mrb[0].mxu0 }
 0x228   : > { %v824_v29 = vpop.f32.mrb[1].mxu0 }
 0x229   : > { %v825_v30 = vadd.f32 %v824_v29, %v823_v27  ;;  %v861_v31 = vpop.f32.mrb[0].mxu1 }
 0x22a   : > { %v862_v32 = vpop.f32.mrb[1].mxu1 }
 0x22b   : > { %v511_v33 = vadd.f32 %v825_v30, %v781_v28  ;;  %v863_v34 = vadd.f32 %v862_v32, %v861_v31 }
 0x22d   : > { %v586_v35 = vadd.f32 %v863_v34, %v511_v33 }
 0x231   : > { %v826_v36 = vpop.f32.mrb[2].mxu0 }
 0x232   : > { %v827_v37 = vpop.f32.mrb[3].mxu0 }
 0x233   : > { %v828_v38 = vadd.f32 %v827_v37, %v826_v36  ;;  %v864_v39 = vpop.f32.mrb[2].mxu1 }
 0x234   : > { %v865_v40 = vpop.f32.mrb[3].mxu1 }
 0x235   : > { %v516_v41 = vadd.f32 %v828_v38, %v781_v28  ;;  %v866_v42 = vadd.f32 %v865_v40, %v864_v39 }
 0x237   : > { %v591_v43 = vadd.f32 %v866_v42, %v516_v41  ;;  %v895_v44 = vpop.f32.mrb[4].mxu0 }
 0x238   : > { %v660_v45 = vpop.f32.mrb[5].mxu0 }
 0x239   : > { %v666_v46 = vadd.f32 %v895_v44, %v591_v43  ;;  %v661_v47 = vadd.f32 %v660_v45, %v586_v35 }
 0x23b   : > { %670 = vst [vmem:[%s257_s12 + $0x8] sm:$0xff] %v666_v46  ;;  %669 = vst [vmem:[%s257_s12] sm:$0xff] %v661_v47 }
 0x23c   : > { %1125 = shalt.err (!%p1122_p7)
}
 0x23d   : > { %s1126_s13 = scalar_lea.hbm %s1416_s24, 256  ;;  %s1130_s27 = scalar_lea.hbm %s1465_s5, 512 }
 0x23e   : > { %p1127_p9 = scmp.ne.s32.totalorder %s1416_s24, %s1126_s13  ;;  %p1131_p5 = scmp.lt.u32.totalorder %s1416_s24, %s1465_s5 }
 0x23f   : > { %p1132_p11 = scmp.lt.u32.totalorder %s1130_s27, %s1126_s13  ;;  %p1134_p4 = scmp.lt.u32.totalorder %s1126_s13, %s1416_s24 }
 0x240   : > { %p1128_p1 = pnand %p1127_p9, %p1322_p12 }
 0x241   : > { %p1133_p2 = por %p1132_p11, %p1131_p5 }
 0x242   : > { %p1129_p0 = pneg %p1128_p1 }
 0x243   : > { %p1135_p6 = por %p1134_p4, %p1133_p2 }
 0x245   : > { %p1136_p8 = pnand %p1135_p6, %p1129_p0 }
 0x247   : > { %1139 = shalt.err (!%p1136_p8)
}
 0x248   : > { %s1196_s26 = smov 128   ;;  %s1197_s16 = smov 8  }
 0x249   : > { %982 = dma.vmem_to_hbm [thread:$0]  (%p1322_p12), %s1411_s7, 256, %s1416_s24, %s672_s11, %s1196_s26, %s1196_s26, %s1197_s16  }
 0x24a PF: > { %s700_s17 = sand.u32 1, %s1170_s18   ;;  %p1480_p10 = scmp.ne.s32.totalorder %s1470_s25, 0 }
 0x24b   : > { %p1481_p13 = scmp.ge.s32.totalorder %s1182_s21, 2  ;;  %s701_s14 = scalar_lea.sflag [#allocation5], %s700_s17 }
 0x24d   : > { %p993_p3 = pnand %p1481_p13, %p1480_p10 }
 0x24f   : > { %1165 = dma.done.wait (!%p993_p3), %s701_s14, 256  }
 0x250   : > { %1167 = vsyncadd (!%p993_p3), %s701_s14, 4294967040  ;;  %p19_p7 = scmp.ge.s32.totalorder %s1284_s30, 4   ;;  %s1482_s18 = smov %s1174_s19 }
 0x251   : > { %s1483_s19 = smov %s1178_s20  ;;  %s1484_s20 = smov %s1318_s8 }
 0x252   : > { %s1485_s21 = smov %s1284_s30  ;;  %21 = sbr.rel (!%p19_p7) target bundleno = 6 (0x6), region = 89 }
 0x259   :  { %706 = vsyncpa [#allocation4], 1 }
 0x25a   :  { %708 = vsyncpa [#allocation4 + $0x1], 1 }
 0x25b   :  { %709 = vsyncpa [#allocation7], 1 }
 0x25c   :  { %710 = vsyncpa [#allocation5], 1 }
 0x25d   :  { %712 = vsyncpa [#allocation5 + $0x1], 1 }

</bundles_post_ra>
